<compile_context>
chip_gen: v6e
topology: v6e:2x2x1
jax: 0.10.0
libtpu: 0.0.40
codegen_flags: <defaults>
</compile_context>

<pallas_src>
import functools
import math

import numpy as np
import jax
import jax.numpy as jnp
from jax import lax
from jax.experimental import pallas as pl
from jax.experimental.pallas import tpu as pltpu

# ----------------------------- model config ---------------------------------
D_MODEL = 32
NUM_HEADS = 4
D_K = D_MODEL // NUM_HEADS
BATCH = 2
SEQ = 8            # == D_K, required by the fused head-scramble trick below


# ------------------------------ Pallas kernel --------------------------------
def _mha_kernel(x_ref, q_ref, pad_ref, wq_ref, bq_ref, wkv_ref, bkv_ref,
                wo_ref, bo_ref, o_ref, *, num_heads, d_k, use_mask):
    S = x_ref.shape[1]
    D = x_ref.shape[2]
    H = num_heads
    dk = d_k
    inv_scale = 1.0 / math.sqrt(float(dk))        # hoisted compile-time constant

    x = x_ref[0]                                  # (S, D)  K/V source
    q_in = q_ref[0]                               # (S, D)  Q source (== x for self-attn)

    # ---- Q and fused K|V projections (weights column-permuted in wrapper so
    # ---- each head's d_k columns are contiguous) --------------------------------
    ql = jnp.dot(q_in, wq_ref[...], preferred_element_type=jnp.float32) + bq_ref[...]
    kv = jnp.dot(x, wkv_ref[...], preferred_element_type=jnp.float32) + bkv_ref[...]
    kl = kv[:, 0:D]
    vl = kv[:, D:2 * D]

    # ---- mask built in-kernel (no (B,H,S,S) tensor ever materialized) -----------
    pm = pad_ref[0]                               # (S, 1); 1.0 = valid, 0.0 = padded
    masked = pm == 0.0                            # query-row masking, like the reference
    if use_mask:
        row = lax.broadcasted_iota(jnp.int32, (S, S), 0)
        col = lax.broadcasted_iota(jnp.int32, (S, S), 1)
        masked = jnp.logical_or(masked, col > row)
    # torch quirk: divisor.masked_fill(mask, -inf) => masked scores become +/-0.0.
    inv = jnp.where(masked, 0.0, inv_scale)

    wo = wo_ref[...]                              # (D, D)
    out = None

    # ---- per-head attention (unrolled; everything stays in VMEM/vregs) ----------
    for h in range(H):
        # column block h of the permuted projection: qlh[s, c] = (W_Q q)[s, c*H + h]
        qlh = ql[:, h * dk:(h + 1) * dk]          # (S, dk)
        klh = kl[:, h * dk:(h + 1) * dk]
        vlh = vl[:, h * dk:(h + 1) * dk]
        # reference scramble (valid since S == dk): Q_h[i, c] = qlh[c, i]
        # scores[i, j] = sum_c Q_h[i, c] K_h[j, c] = (qlh^T @ klh)[i, j]
        scores = lax.dot_general(qlh, klh, (((0,), (0,)), ((), ())),
                                 preferred_element_type=jnp.float32)   # (S, S)
        scores = scores * inv                     # masked entries -> +/-0.0
        m = jnp.max(scores, axis=-1, keepdims=True)
        e = jnp.exp(scores - m)
        inv_l = pl.reciprocal(jnp.sum(e, axis=-1, keepdims=True), approx=True)
        # ctx[i, c] = sum_j p[i, j] V_h[j, c] = sum_j p[i, j] vlh[c, j];
        # softmax normalization folded into the narrow (S, dk) context.
        ctx = lax.dot_general(e, vlh, (((1,), (1,)), ((), ())),
                              preferred_element_type=jnp.float32) * inv_l
        # merged[:, h*dk:(h+1)*dk] = ctx ; fold the output projection in directly
        contrib = jnp.dot(ctx, wo[h * dk:(h + 1) * dk, :],
                          preferred_element_type=jnp.float32)
        out = contrib if out is None else out + contrib

    o_ref[0] = out + bo_ref[...]


# ------------------------------ wrapper --------------------------------------
def multi_head_attention(params, batch_X, padding_mask, dropout_rate=0.0,
                         encoder_output=None, use_mask=False):
    # dropout_rate is accepted but unused, exactly like the reference forward.
    B, S, D = batch_X.shape
    H = NUM_HEADS
    dk = D // H
    # TODO(synk): the reference permute/reshape head scramble for S != d_k needs an
    # in-kernel gather; this fused kernel implements the (exact) S == d_k case.
    assert S == dk, "fused kernel assumes seq_len == d_k (holds for this module config)"

    # Permute W_Q/W_K/W_V columns so head h's d_k columns are contiguous:
    #   W_p[:, h*dk + c] = W[:, c*H + h]
    perm = np.arange(D).reshape(dk, H).T.reshape(-1)

    wq = params["wq"][:, perm]
    bq = params["bq"][perm].reshape(1, D)
    wk, bk = params["wk"][:, perm], params["bk"][perm]
    wv, bv = params["wv"][:, perm], params["bv"][perm]
    wkv = jnp.concatenate([wk, wv], axis=1)                  # (D, 2D) fused K|V weight
    bkv = jnp.concatenate([bk, bv]).reshape(1, 2 * D)        # (1, 2D)
    wo = params["wo"]                                        # (D, D)
    bo = params["bo"].reshape(1, D)                          # (1, D)
    pad3 = padding_mask.astype(jnp.float32).reshape(B, S, 1) # (B, S, 1)

    q_in = batch_X if encoder_output is None else encoder_output
    kern = functools.partial(_mha_kernel, num_heads=H, d_k=dk, use_mask=use_mask)

    act_spec = pl.BlockSpec((1, S, D), lambda b: (b, 0, 0))
    return pl.pallas_call(
        kern,
        out_shape=jax.ShapeDtypeStruct((B, S, D), jnp.float32),
        grid=(B,),
        in_specs=[
            act_spec,                                        # x (K/V source)
            act_spec,                                        # q source
            pl.BlockSpec((1, S, 1), lambda b: (b, 0, 0)),    # padding mask
            pl.BlockSpec((D, D), lambda b: (0, 0)),          # W_Q (permuted)
            pl.BlockSpec((1, D), lambda b: (0, 0)),          # b_Q (permuted)
            pl.BlockSpec((D, 2 * D), lambda b: (0, 0)),      # W_K|W_V (permuted, fused)
            pl.BlockSpec((1, 2 * D), lambda b: (0, 0)),      # b_K|b_V
            pl.BlockSpec((D, D), lambda b: (0, 0)),          # W_O
            pl.BlockSpec((1, D), lambda b: (0, 0)),          # b_O
        ],
        out_specs=pl.BlockSpec((1, S, D), lambda b: (b, 0, 0)),
        compiler_params=pltpu.CompilerParams(
            dimension_semantics=("parallel",)),
    )(batch_X, q_in, pad3, wq, bq, wkv, bkv, wo, bo)


# ------------------------ pure-JAX reference (torch-faithful) -----------------
def mha_reference(params, batch_X, padding_mask, encoder_output=None, use_mask=False):
    B, S, D = batch_X.shape
    H, dk = NUM_HEADS, D // NUM_HEADS
    q_in = batch_X if encoder_output is None else encoder_output
    hi = lax.Precision.HIGHEST

    def lin(x, w, b):
        return jnp.dot(x, w, precision=hi) + b

    def split(t):  # x.permute(0,2,1).reshape(B,S,H,dk).permute(0,2,1,3)
        return jnp.transpose(jnp.transpose(t, (0, 2, 1)).reshape(B, S, H, dk),
                             (0, 2, 1, 3))

    Q = split(lin(q_in, params["wq"], params["bq"]))
    K = split(lin(batch_X, params["wk"], params["bk"]))
    V = split(lin(batch_X, params["wv"], params["bv"]))

    pm = jnp.broadcast_to(padding_mask[:, :, None], (B, S, S))
    if use_mask:
        causal = jnp.tril(jnp.ones((S, S), jnp.float32))
        comb = jnp.minimum(pm, causal[None, :, :])
    else:
        comb = pm
    mask = (comb == 0)[:, None, :, :]                             # (B,1,S,S)

    denom = jnp.where(mask, -jnp.inf, jnp.sqrt(jnp.float32(dk)))
    scores = jnp.einsum('bhqc,bhkc->bhqk', Q, K, precision=hi) / denom
    probs = jax.nn.softmax(scores, axis=-1)
    ctx = jnp.einsum('bhqk,bhkc->bhqc', probs, V, precision=hi)
    ctx = jnp.transpose(ctx, (0, 2, 1, 3)).reshape(B, S, D)
    return lin(ctx, params["wo"], params["bo"])


# ------------------------------ parameter init --------------------------------
def init_params(key):
    def lin_init(k, d_in, d_out, scale=0.05):
        kw, kb = jax.random.split(k)
        return (scale * jax.random.normal(kw, (d_in, d_out), jnp.float32),
                scale * jax.random.normal(kb, (d_out,), jnp.float32))

    ks = jax.random.split(key, 4)
    wq, bq = lin_init(ks[0], D_MODEL, D_MODEL)
    wk, bk = lin_init(ks[1], D_MODEL, D_MODEL)
    wv, bv = lin_init(ks[2], D_MODEL, D_MODEL)
    wo, bo = lin_init(ks[3], D_MODEL, D_MODEL)
    return dict(wq=wq, bq=bq, wk=wk, bk=bk, wv=wv, bv=bv, wo=wo, bo=bo)


# ----------------------------------- main --------------------------------------
if __name__ == "__main__":
    key = jax.random.PRNGKey(0)
    k_x, k_enc, k_p = jax.random.split(key, 3)

    batch_X = jax.random.normal(k_x, (BATCH, SEQ, D_MODEL), jnp.float32)
    encoder_output = jax.random.normal(k_enc, (BATCH, SEQ, D_MODEL), jnp.float32)
    # padding mask: 1.0 = valid token, 0.0 = padded
    padding_mask = jnp.array(
        [[1, 1, 1, 1, 1, 1, 0, 0],
         [1, 1, 1, 1, 1, 1, 1, 1]], jnp.float32)

    params = init_params(k_p)

    # masked self-attention (decoder-style) and cross-attention variants
    self_fwd = jax.jit(
        lambda p, x, pm: multi_head_attention(p, x, pm, 0.0, None, True))
    cross_fwd = jax.jit(
        lambda p, x, pm, enc: multi_head_attention(p, x, pm, 0.0, enc, False))

    out_self = jax.block_until_ready(self_fwd(params, batch_X, padding_mask))
    out_cross = jax.block_until_ready(
        cross_fwd(params, batch_X, padding_mask, encoder_output))

    assert out_self.shape == (BATCH, SEQ, D_MODEL)
    assert out_cross.shape == (BATCH, SEQ, D_MODEL)

    ref_self = mha_reference(params, batch_X, padding_mask, None, True)
    ref_cross = mha_reference(params, batch_X, padding_mask, encoder_output, False)
    np.testing.assert_allclose(np.asarray(out_self), np.asarray(ref_self),
                               rtol=1e-2, atol=1e-2)
    np.testing.assert_allclose(np.asarray(out_cross), np.asarray(ref_cross),
                               rtol=1e-2, atol=1e-2)

    print("KERNEL_OK")
</pallas_src>

<mosaic_0001>
module attributes {stable_mosaic.version = 11 : i64} {
  func.func @_mha_kernel(%arg0: i32, %arg1: memref<1x8x32xf32, #tpu.memory_space<vmem>>, %arg2: memref<1x8x32xf32, #tpu.memory_space<vmem>>, %arg3: memref<1x8x1xf32, #tpu.memory_space<vmem>>, %arg4: memref<32x32xf32, #tpu.memory_space<vmem>>, %arg5: memref<1x32xf32, #tpu.memory_space<vmem>>, %arg6: memref<32x64xf32, #tpu.memory_space<vmem>>, %arg7: memref<1x64xf32, #tpu.memory_space<vmem>>, %arg8: memref<32x32xf32, #tpu.memory_space<vmem>>, %arg9: memref<1x32xf32, #tpu.memory_space<vmem>>, %arg10: memref<1x8x32xf32, #tpu.memory_space<vmem>>) attributes {dimension_semantics = [#tpu.dimension_semantics<parallel>], iteration_bounds = array<i64: 2>, scalar_prefetch = 0 : i64, scratch_operands = 0 : i64, tpu.core_type = #tpu.core_type<tc>, window_params = [{transform_indices = @transform_0, window_bounds = array<i64: 1, 8, 32>}, {transform_indices = @transform_1, window_bounds = array<i64: 1, 8, 32>}, {transform_indices = @transform_2, window_bounds = array<i64: 1, 8, 1>}, {pipeline_mode = #tpu.pipeline_mode<synchronous>, transform_indices = @transform_3, window_bounds = array<i64: 32, 32>}, {pipeline_mode = #tpu.pipeline_mode<synchronous>, transform_indices = @transform_4, window_bounds = array<i64: 1, 32>}, {pipeline_mode = #tpu.pipeline_mode<synchronous>, transform_indices = @transform_5, window_bounds = array<i64: 32, 64>}, {pipeline_mode = #tpu.pipeline_mode<synchronous>, transform_indices = @transform_6, window_bounds = array<i64: 1, 64>}, {pipeline_mode = #tpu.pipeline_mode<synchronous>, transform_indices = @transform_7, window_bounds = array<i64: 32, 32>}, {pipeline_mode = #tpu.pipeline_mode<synchronous>, transform_indices = @transform_8, window_bounds = array<i64: 1, 32>}, {transform_indices = @transform_9, window_bounds = array<i64: 1, 8, 32>}]} {
    %c0 = arith.constant 0 : index
    %c0_0 = arith.constant 0 : index
    %c0_1 = arith.constant 0 : index
    %0 = vector.load %arg1[%c0, %c0_0, %c0_1] : memref<1x8x32xf32, #tpu.memory_space<vmem>>, vector<1x8x32xf32>
    %1 = vector.shape_cast %0 : vector<1x8x32xf32> to vector<8x32xf32>
    %c0_2 = arith.constant 0 : index
    %c0_3 = arith.constant 0 : index
    %c0_4 = arith.constant 0 : index
    %2 = vector.load %arg2[%c0_2, %c0_3, %c0_4] : memref<1x8x32xf32, #tpu.memory_space<vmem>>, vector<1x8x32xf32>
    %3 = vector.shape_cast %2 : vector<1x8x32xf32> to vector<8x32xf32>
    %c0_5 = arith.constant 0 : index
    %c0_6 = arith.constant 0 : index
    %4 = vector.load %arg4[%c0_5, %c0_6] : memref<32x32xf32, #tpu.memory_space<vmem>>, vector<32x32xf32>
    %cst = arith.constant dense<0.000000e+00> : vector<8x32xf32>
    %5 = tpu.matmul %3, %4, %cst {dimension_numbers = #tpu.dot_dimension_numbers<[1], [0], [0], [1], [0, 0, 1, 1], [], []>} : vector<8x32xf32>, vector<32x32xf32>, vector<8x32xf32> -> vector<8x32xf32>
    %c0_7 = arith.constant 0 : index
    %c0_8 = arith.constant 0 : index
    %6 = vector.load %arg5[%c0_7, %c0_8] : memref<1x32xf32, #tpu.memory_space<vmem>>, vector<1x32xf32>
    %7 = vector.broadcast %6 : vector<1x32xf32> to vector<8x32xf32>
    %8 = arith.addf %5, %7 : vector<8x32xf32>
    %c0_9 = arith.constant 0 : index
    %c0_10 = arith.constant 0 : index
    %9 = vector.load %arg6[%c0_9, %c0_10] : memref<32x64xf32, #tpu.memory_space<vmem>>, vector<32x64xf32>
    %cst_11 = arith.constant dense<0.000000e+00> : vector<8x64xf32>
    %10 = tpu.matmul %1, %9, %cst_11 {dimension_numbers = #tpu.dot_dimension_numbers<[1], [0], [0], [1], [0, 0, 1, 1], [], []>} : vector<8x32xf32>, vector<32x64xf32>, vector<8x64xf32> -> vector<8x64xf32>
    %c0_12 = arith.constant 0 : index
    %c0_13 = arith.constant 0 : index
    %11 = vector.load %arg7[%c0_12, %c0_13] : memref<1x64xf32, #tpu.memory_space<vmem>>, vector<1x64xf32>
    %12 = vector.broadcast %11 : vector<1x64xf32> to vector<8x64xf32>
    %13 = arith.addf %10, %12 : vector<8x64xf32>
    %14 = vector.extract_strided_slice %13 {offsets = [0, 0], sizes = [8, 32], strides = [1, 1]} : vector<8x64xf32> to vector<8x32xf32>
    %15 = vector.extract_strided_slice %13 {offsets = [0, 32], sizes = [8, 32], strides = [1, 1]} : vector<8x64xf32> to vector<8x32xf32>
    %c0_14 = arith.constant 0 : index
    %c0_15 = arith.constant 0 : index
    %c0_16 = arith.constant 0 : index
    %16 = vector.load %arg3[%c0_14, %c0_15, %c0_16] : memref<1x8x1xf32, #tpu.memory_space<vmem>>, vector<1x8x1xf32>
    %17 = vector.shape_cast %16 : vector<1x8x1xf32> to vector<8x1xf32>
    %cst_17 = arith.constant 0.000000e+00 : f32
    %18 = vector.broadcast %cst_17 : f32 to vector<8x1xf32>
    %19 = arith.cmpf oeq, %17, %18 : vector<8x1xf32>
    %20 = tpu.iota {dimensions = array<i32: 0>} : vector<8x8xi32>
    %21 = tpu.iota {dimensions = array<i32: 1>} : vector<8x8xi32>
    %22 = arith.cmpi sgt, %21, %20 : vector<8x8xi32>
    %23 = vector.broadcast %19 : vector<8x1xi1> to vector<8x8xi1>
    %24 = arith.ori %23, %22 : vector<8x8xi1>
    %cst_18 = arith.constant 0.000000e+00 : f32
    %cst_19 = arith.constant 0.353553385 : f32
    %25 = vector.broadcast %cst_18 : f32 to vector<8x8xf32>
    %26 = vector.broadcast %cst_19 : f32 to vector<8x8xf32>
    %27 = arith.select %24, %25, %26 : vector<8x8xi1>, vector<8x8xf32>
    %c0_20 = arith.constant 0 : index
    %c0_21 = arith.constant 0 : index
    %28 = vector.load %arg8[%c0_20, %c0_21] : memref<32x32xf32, #tpu.memory_space<vmem>>, vector<32x32xf32>
    %29 = vector.extract_strided_slice %8 {offsets = [0, 0], sizes = [8, 8], strides = [1, 1]} : vector<8x32xf32> to vector<8x8xf32>
    %30 = vector.extract_strided_slice %14 {offsets = [0, 0], sizes = [8, 8], strides = [1, 1]} : vector<8x32xf32> to vector<8x8xf32>
    %31 = vector.extract_strided_slice %15 {offsets = [0, 0], sizes = [8, 8], strides = [1, 1]} : vector<8x32xf32> to vector<8x8xf32>
    %cst_22 = arith.constant dense<0.000000e+00> : vector<8x8xf32>
    %32 = tpu.matmul %29, %30, %cst_22 {dimension_numbers = #tpu.dot_dimension_numbers<[0], [0], [1], [1], [0, 1, 1, 1], [], []>} : vector<8x8xf32>, vector<8x8xf32>, vector<8x8xf32> -> vector<8x8xf32>
    %33 = arith.mulf %32, %27 : vector<8x8xf32>
    %cst_23 = arith.constant dense<0xFF800000> : vector<8xf32>
    %34 = vector.multi_reduction <maximumf>, %33, %cst_23 [1] : vector<8x8xf32> to vector<8xf32>
    %35 = vector.shape_cast %34 : vector<8xf32> to vector<8x1xf32>
    %36 = vector.broadcast %35 : vector<8x1xf32> to vector<8x8xf32>
    %37 = arith.subf %33, %36 : vector<8x8xf32>
    %38 = math.exp %37 : vector<8x8xf32>
    %cst_24 = arith.constant dense<0.000000e+00> : vector<8xf32>
    %39 = vector.multi_reduction <add>, %38, %cst_24 [1] : vector<8x8xf32> to vector<8xf32>
    %40 = vector.shape_cast %39 : vector<8xf32> to vector<8x1xf32>
    %41 = tpu.reciprocal %40 {approx = true} : vector<8x1xf32> -> vector<8x1xf32>
    %cst_25 = arith.constant dense<0.000000e+00> : vector<8x8xf32>
    %42 = tpu.matmul %38, %31, %cst_25 {dimension_numbers = #tpu.dot_dimension_numbers<[1], [1], [0], [0], [0, 0, 1, 0], [], []>} : vector<8x8xf32>, vector<8x8xf32>, vector<8x8xf32> -> vector<8x8xf32>
    %43 = vector.broadcast %41 : vector<8x1xf32> to vector<8x8xf32>
    %44 = arith.mulf %42, %43 : vector<8x8xf32>
    %45 = vector.extract_strided_slice %28 {offsets = [0, 0], sizes = [8, 32], strides = [1, 1]} : vector<32x32xf32> to vector<8x32xf32>
    %cst_26 = arith.constant dense<0.000000e+00> : vector<8x32xf32>
    %46 = tpu.matmul %44, %45, %cst_26 {dimension_numbers = #tpu.dot_dimension_numbers<[1], [0], [0], [1], [0, 0, 1, 1], [], []>} : vector<8x8xf32>, vector<8x32xf32>, vector<8x32xf32> -> vector<8x32xf32>
    %47 = vector.extract_strided_slice %8 {offsets = [0, 8], sizes = [8, 8], strides = [1, 1]} : vector<8x32xf32> to vector<8x8xf32>
    %48 = vector.extract_strided_slice %14 {offsets = [0, 8], sizes = [8, 8], strides = [1, 1]} : vector<8x32xf32> to vector<8x8xf32>
    %49 = vector.extract_strided_slice %15 {offsets = [0, 8], sizes = [8, 8], strides = [1, 1]} : vector<8x32xf32> to vector<8x8xf32>
    %cst_27 = arith.constant dense<0.000000e+00> : vector<8x8xf32>
    %50 = tpu.matmul %47, %48, %cst_27 {dimension_numbers = #tpu.dot_dimension_numbers<[0], [0], [1], [1], [0, 1, 1, 1], [], []>} : vector<8x8xf32>, vector<8x8xf32>, vector<8x8xf32> -> vector<8x8xf32>
    %51 = arith.mulf %50, %27 : vector<8x8xf32>
    %cst_28 = arith.constant dense<0xFF800000> : vector<8xf32>
    %52 = vector.multi_reduction <maximumf>, %51, %cst_28 [1] : vector<8x8xf32> to vector<8xf32>
    %53 = vector.shape_cast %52 : vector<8xf32> to vector<8x1xf32>
    %54 = vector.broadcast %53 : vector<8x1xf32> to vector<8x8xf32>
    %55 = arith.subf %51, %54 : vector<8x8xf32>
    %56 = math.exp %55 : vector<8x8xf32>
    %cst_29 = arith.constant dense<0.000000e+00> : vector<8xf32>
    %57 = vector.multi_reduction <add>, %56, %cst_29 [1] : vector<8x8xf32> to vector<8xf32>
    %58 = vector.shape_cast %57 : vector<8xf32> to vector<8x1xf32>
    %59 = tpu.reciprocal %58 {approx = true} : vector<8x1xf32> -> vector<8x1xf32>
    %cst_30 = arith.constant dense<0.000000e+00> : vector<8x8xf32>
    %60 = tpu.matmul %56, %49, %cst_30 {dimension_numbers = #tpu.dot_dimension_numbers<[1], [1], [0], [0], [0, 0, 1, 0], [], []>} : vector<8x8xf32>, vector<8x8xf32>, vector<8x8xf32> -> vector<8x8xf32>
    %61 = vector.broadcast %59 : vector<8x1xf32> to vector<8x8xf32>
    %62 = arith.mulf %60, %61 : vector<8x8xf32>
    %63 = vector.extract_strided_slice %28 {offsets = [8, 0], sizes = [8, 32], strides = [1, 1]} : vector<32x32xf32> to vector<8x32xf32>
    %cst_31 = arith.constant dense<0.000000e+00> : vector<8x32xf32>
    %64 = tpu.matmul %62, %63, %cst_31 {dimension_numbers = #tpu.dot_dimension_numbers<[1], [0], [0], [1], [0, 0, 1, 1], [], []>} : vector<8x8xf32>, vector<8x32xf32>, vector<8x32xf32> -> vector<8x32xf32>
    %65 = arith.addf %46, %64 : vector<8x32xf32>
    %66 = vector.extract_strided_slice %8 {offsets = [0, 16], sizes = [8, 8], strides = [1, 1]} : vector<8x32xf32> to vector<8x8xf32>
    %67 = vector.extract_strided_slice %14 {offsets = [0, 16], sizes = [8, 8], strides = [1, 1]} : vector<8x32xf32> to vector<8x8xf32>
    %68 = vector.extract_strided_slice %15 {offsets = [0, 16], sizes = [8, 8], strides = [1, 1]} : vector<8x32xf32> to vector<8x8xf32>
    %cst_32 = arith.constant dense<0.000000e+00> : vector<8x8xf32>
    %69 = tpu.matmul %66, %67, %cst_32 {dimension_numbers = #tpu.dot_dimension_numbers<[0], [0], [1], [1], [0, 1, 1, 1], [], []>} : vector<8x8xf32>, vector<8x8xf32>, vector<8x8xf32> -> vector<8x8xf32>
    %70 = arith.mulf %69, %27 : vector<8x8xf32>
    %cst_33 = arith.constant dense<0xFF800000> : vector<8xf32>
    %71 = vector.multi_reduction <maximumf>, %70, %cst_33 [1] : vector<8x8xf32> to vector<8xf32>
    %72 = vector.shape_cast %71 : vector<8xf32> to vector<8x1xf32>
    %73 = vector.broadcast %72 : vector<8x1xf32> to vector<8x8xf32>
    %74 = arith.subf %70, %73 : vector<8x8xf32>
    %75 = math.exp %74 : vector<8x8xf32>
    %cst_34 = arith.constant dense<0.000000e+00> : vector<8xf32>
    %76 = vector.multi_reduction <add>, %75, %cst_34 [1] : vector<8x8xf32> to vector<8xf32>
    %77 = vector.shape_cast %76 : vector<8xf32> to vector<8x1xf32>
    %78 = tpu.reciprocal %77 {approx = true} : vector<8x1xf32> -> vector<8x1xf32>
    %cst_35 = arith.constant dense<0.000000e+00> : vector<8x8xf32>
    %79 = tpu.matmul %75, %68, %cst_35 {dimension_numbers = #tpu.dot_dimension_numbers<[1], [1], [0], [0], [0, 0, 1, 0], [], []>} : vector<8x8xf32>, vector<8x8xf32>, vector<8x8xf32> -> vector<8x8xf32>
    %80 = vector.broadcast %78 : vector<8x1xf32> to vector<8x8xf32>
    %81 = arith.mulf %79, %80 : vector<8x8xf32>
    %82 = vector.extract_strided_slice %28 {offsets = [16, 0], sizes = [8, 32], strides = [1, 1]} : vector<32x32xf32> to vector<8x32xf32>
    %cst_36 = arith.constant dense<0.000000e+00> : vector<8x32xf32>
    %83 = tpu.matmul %81, %82, %cst_36 {dimension_numbers = #tpu.dot_dimension_numbers<[1], [0], [0], [1], [0, 0, 1, 1], [], []>} : vector<8x8xf32>, vector<8x32xf32>, vector<8x32xf32> -> vector<8x32xf32>
    %84 = arith.addf %65, %83 : vector<8x32xf32>
    %85 = vector.extract_strided_slice %8 {offsets = [0, 24], sizes = [8, 8], strides = [1, 1]} : vector<8x32xf32> to vector<8x8xf32>
    %86 = vector.extract_strided_slice %14 {offsets = [0, 24], sizes = [8, 8], strides = [1, 1]} : vector<8x32xf32> to vector<8x8xf32>
    %87 = vector.extract_strided_slice %15 {offsets = [0, 24], sizes = [8, 8], strides = [1, 1]} : vector<8x32xf32> to vector<8x8xf32>
    %cst_37 = arith.constant dense<0.000000e+00> : vector<8x8xf32>
    %88 = tpu.matmul %85, %86, %cst_37 {dimension_numbers = #tpu.dot_dimension_numbers<[0], [0], [1], [1], [0, 1, 1, 1], [], []>} : vector<8x8xf32>, vector<8x8xf32>, vector<8x8xf32> -> vector<8x8xf32>
    %89 = arith.mulf %88, %27 : vector<8x8xf32>
    %cst_38 = arith.constant dense<0xFF800000> : vector<8xf32>
    %90 = vector.multi_reduction <maximumf>, %89, %cst_38 [1] : vector<8x8xf32> to vector<8xf32>
    %91 = vector.shape_cast %90 : vector<8xf32> to vector<8x1xf32>
    %92 = vector.broadcast %91 : vector<8x1xf32> to vector<8x8xf32>
    %93 = arith.subf %89, %92 : vector<8x8xf32>
    %94 = math.exp %93 : vector<8x8xf32>
    %cst_39 = arith.constant dense<0.000000e+00> : vector<8xf32>
    %95 = vector.multi_reduction <add>, %94, %cst_39 [1] : vector<8x8xf32> to vector<8xf32>
    %96 = vector.shape_cast %95 : vector<8xf32> to vector<8x1xf32>
    %97 = tpu.reciprocal %96 {approx = true} : vector<8x1xf32> -> vector<8x1xf32>
    %cst_40 = arith.constant dense<0.000000e+00> : vector<8x8xf32>
    %98 = tpu.matmul %94, %87, %cst_40 {dimension_numbers = #tpu.dot_dimension_numbers<[1], [1], [0], [0], [0, 0, 1, 0], [], []>} : vector<8x8xf32>, vector<8x8xf32>, vector<8x8xf32> -> vector<8x8xf32>
    %99 = vector.broadcast %97 : vector<8x1xf32> to vector<8x8xf32>
    %100 = arith.mulf %98, %99 : vector<8x8xf32>
    %101 = vector.extract_strided_slice %28 {offsets = [24, 0], sizes = [8, 32], strides = [1, 1]} : vector<32x32xf32> to vector<8x32xf32>
    %cst_41 = arith.constant dense<0.000000e+00> : vector<8x32xf32>
    %102 = tpu.matmul %100, %101, %cst_41 {dimension_numbers = #tpu.dot_dimension_numbers<[1], [0], [0], [1], [0, 0, 1, 1], [], []>} : vector<8x8xf32>, vector<8x32xf32>, vector<8x32xf32> -> vector<8x32xf32>
    %103 = arith.addf %84, %102 : vector<8x32xf32>
    %c0_42 = arith.constant 0 : index
    %c0_43 = arith.constant 0 : index
    %104 = vector.load %arg9[%c0_42, %c0_43] : memref<1x32xf32, #tpu.memory_space<vmem>>, vector<1x32xf32>
    %105 = vector.broadcast %104 : vector<1x32xf32> to vector<8x32xf32>
    %106 = arith.addf %103, %105 : vector<8x32xf32>
    %c0_44 = arith.constant 0 : index
    %c0_45 = arith.constant 0 : index
    %c0_46 = arith.constant 0 : index
    %107 = vector.load %arg10[%c0_44, %c0_45, %c0_46] : memref<1x8x32xf32, #tpu.memory_space<vmem>>, vector<1x8x32xf32>
    %108 = vector.shape_cast %107 : vector<1x8x32xf32> to vector<8x32xf32>
    %109 = vector.shape_cast %106 : vector<8x32xf32> to vector<1x8x32xf32>
    tpu.vector_store %arg10[%c0_44, %c0_45, %c0_46], %109 {strides = array<i32>} : memref<1x8x32xf32, #tpu.memory_space<vmem>>, vector<1x8x32xf32>,
    return
  }
  func.func @transform_0(%arg0: i32) -> (i32, i32, i32) {
    %c0_i32 = arith.constant 0 : i32
    %c0_i32_0 = arith.constant 0 : i32
    %c0_i32_1 = arith.constant 0 : i32
    return %arg0, %c0_i32, %c0_i32_0 : i32, i32, i32
  }
  func.func @transform_1(%arg0: i32) -> (i32, i32, i32) {
    %c0_i32 = arith.constant 0 : i32
    %c0_i32_0 = arith.constant 0 : i32
    %c0_i32_1 = arith.constant 0 : i32
    return %arg0, %c0_i32, %c0_i32_0 : i32, i32, i32
  }
  func.func @transform_2(%arg0: i32) -> (i32, i32, i32) {
    %c0_i32 = arith.constant 0 : i32
    %c0_i32_0 = arith.constant 0 : i32
    %c0_i32_1 = arith.constant 0 : i32
    return %arg0, %c0_i32, %c0_i32_0 : i32, i32, i32
  }
  func.func @transform_3(%arg0: i32) -> (i32, i32) {
    %c0_i32 = arith.constant 0 : i32
    %c0_i32_0 = arith.constant 0 : i32
    %c0_i32_1 = arith.constant 0 : i32
    return %c0_i32, %c0_i32_0 : i32, i32
  }
  func.func @transform_4(%arg0: i32) -> (i32, i32) {
    %c0_i32 = arith.constant 0 : i32
    %c0_i32_0 = arith.constant 0 : i32
    %c0_i32_1 = arith.constant 0 : i32
    return %c0_i32, %c0_i32_0 : i32, i32
  }
  func.func @transform_5(%arg0: i32) -> (i32, i32) {
    %c0_i32 = arith.constant 0 : i32
    %c0_i32_0 = arith.constant 0 : i32
    %c0_i32_1 = arith.constant 0 : i32
    return %c0_i32, %c0_i32_0 : i32, i32
  }
  func.func @transform_6(%arg0: i32) -> (i32, i32) {
    %c0_i32 = arith.constant 0 : i32
    %c0_i32_0 = arith.constant 0 : i32
    %c0_i32_1 = arith.constant 0 : i32
    return %c0_i32, %c0_i32_0 : i32, i32
  }
  func.func @transform_7(%arg0: i32) -> (i32, i32) {
    %c0_i32 = arith.constant 0 : i32
    %c0_i32_0 = arith.constant 0 : i32
    %c0_i32_1 = arith.constant 0 : i32
    return %c0_i32, %c0_i32_0 : i32, i32
  }
  func.func @transform_8(%arg0: i32) -> (i32, i32) {
    %c0_i32 = arith.constant 0 : i32
    %c0_i32_0 = arith.constant 0 : i32
    %c0_i32_1 = arith.constant 0 : i32
    return %c0_i32, %c0_i32_0 : i32, i32
  }
  func.func @transform_9(%arg0: i32) -> (i32, i32, i32) {
    %c0_i32 = arith.constant 0 : i32
    %c0_i32_0 = arith.constant 0 : i32
    %c0_i32_1 = arith.constant 0 : i32
    return %arg0, %c0_i32, %c0_i32_0 : i32, i32, i32
  }
}

</mosaic_0001>

<bundles_post_ra>
// kernel: _lambda_.1
= control target key start
LH: loop header
LB: loop body
LE: loop exit
PB: predicated region body
PF: predicated region fallthrough
CT: control target
= control target key end

     0   :  { %14 = vsyncpa [#allocation3], 0  ;;  %s2330_s0 = inlined_call_operand.vmem [shape: f32[2,8,32], index: 0, kind: input, shape index: {}, may-alias: {0,1}]   ;;  %s2331_s1 = inlined_call_operand.vmem [shape: f32[2,8,32], index: 1, kind: input, shape index: {}, may-alias: {0,1}]   ;;  %s2332_s2 = inlined_call_operand.vmem [shape: f32[2,8,1], index: 2, kind: input, shape index: {}]   ;;  %s2333_s3 = inlined_call_operand.vmem [shape: f32[32,32], index: 3, kind: input, shape index: {}]   ;;  %s2334_s4 = inlined_call_operand.vmem [shape: f32[1,32], index: 4, kind: input, shape index: {}]   ;;  %s2335_s5 = inlined_call_operand.vmem [shape: f32[32,64], index: 5, kind: input, shape index: {}]   ;;  %s2336_s6 = inlined_call_operand.vmem [shape: f32[1,64], index: 6, kind: input, shape index: {}]   ;;  %s2337_s7 = inlined_call_operand.vmem [shape: f32[32,32], index: 7, kind: input, shape index: {}]   ;;  %s2338_s8 = inlined_call_operand.vmem [shape: f32[1,32], index: 8, kind: input, shape index: {}]   ;;  %s2339_s9 = inlined_call_operand.hbm [shape: f32[2,8,32], index: 9, kind: output, shape index: {}]  }
   0x1   :  { %16 = vsyncpa [#allocation3 + $0x1], 0  ;;  %s2088_s30 = smov 0   ;;  %s2090_s10 = smov 0  }
   0x2   :  { %s2092_s11 = smov 0   ;;  %s2094_s12 = smov 0  }
   0x3 LB: > { %s2109_s13 = sadd.s32 4294967295, %s2024_s12   ;;  %s1748_s14 = sadd.s32 4294967294, %s2024_s12   ;;  %s2024_s12 = sphi %s2094_s12, %s2345_s12   ;;  %s2020_s11 = sphi %s2092_s11, %s2344_s11   ;;  %s2016_s10 = sphi %s2090_s10, %s2343_s10   ;;  %s2012_s30 = sphi %s2088_s30, %s2342_s30  }
   0x4   : > { %s2113_s15 = sadd.s32 1, %s2024_s12   ;;  %s233_s16 = sadd.s32 1, %s2020_s11 }
   0x5   : > { %s230_s17 = ssub.s32 %s2024_s12, %s2113_s15  ;;  %p243_p0 = scmp.ne.s32.totalorder %s2020_s11, %s2016_s10 }
   0x6   : > { %p231_p1 = scmp.eq.s32.totalorder %s230_s17, 0  ;;  %p244_p2 = scmp.eq.s32.totalorder %s2109_s13, 1 }
   0x7   : > { %p249_p3 = scmp.ne.s32.totalorder %s2016_s10, %s2012_s30  ;;  %p250_p4 = scmp.eq.s32.totalorder %s1748_s14, 1 }
   0x8   : > { %s2124_s18 = scalar_select %p231_p1, %s2020_s11, %s233_s16  }
   0x9   : > { %p2126_p5 = por %p244_p2, %p243_p0  ;;  %p2130_p6 = por %p250_p4, %p249_p3 }
   0xa   : > { %p1751_p7 = scmp.ge.s32.totalorder %s2024_s12, 1  ;;  %p307_p8 = scmp.lt.s32.totalorder %s2024_s12, 3 }
   0xc   : > { %p308_p9 = pnand %p1751_p7, %p307_p8 }
   0xd   : > { %p350_p10 = scmp.lt.s32.totalorder (!%p308_p9), %s2109_s13, 1  ;;  %s2029_s29 = smov (!%p308_p9), 120  }
   0xe   : > { %311 = sbr.rel (%p308_p9) target bundleno = 2150 (0x866), region = 56  ;;  %s2033_s16 = smov (!%p308_p9), 96  }
   0xf   : > { %s2034_s21 = smov (!%p308_p9), 104   ;;  %s2035_s22 = smov (!%p308_p9), 80  }
  0x10   : > { %s1778_s24 = sshll.u32 (!%p308_p9), %s2109_s13, 7 }
  0x13   : > { %v367_v0 = vld [vmem:[%s2333_s3 + $0x18] sm:$0xff]  ;;  %v2026_v1 = vmov 0.0   ;;  %v366_v2 = vld [vmem:[%s2333_s3 + $0x10] sm:$0xff]  ;;  %vm2027_vm0 = vmmov 0   ;;  %s351_s27 = scalar_select %p350_p10, %s2109_s13, 1  ;;  %v365_v5 = vld [vmem:[%s2333_s3 + $0x8] sm:$0xff]  ;;  %v535_v26 = vlaneseq }
  0x14   : > { %1815 = vmatprep.subr.mxu0 %v2026_v1  ;;  %1823 = vmatprep.mubr.msk.f32.mxu0 %vm2027_vm0, %v2026_v1  ;;  %v452_v3 = vld [vmem:[%s2335_s5 + $0x18] sm:$0xff]  ;;  %v451_v4 = vld [vmem:[%s2335_s5 + $0x10] sm:$0xff]  ;;  %v450_v6 = vld [vmem:[%s2335_s5 + $0x8] sm:$0xff]  ;;  %vm375_vm1 = vcmask 261120   ;;  %v2028_v15 = vmov 0   ;;  %vm583_vm3 = vcmask 64512  }
  0x15   : > { %1816 = vmatpush3.msra.mxu0 %v367_v0  ;;  %1826 = vmatprep.subr.mxu1 %v2026_v1  ;;  %s2158_s17 = sshll.u32 %s351_s27, 3  ;;  %v364_v7 = vld [vmem:[%s2333_s3] sm:$0xff]  ;;  %v536_v27 = vshrl.u32 %v535_v26, 7  ;;  %v538_v28 = vand.u32 127, %v535_v26  ;;  %v2030_v30 = vmov 0.35355338  }
  0x16   : > { %1817 = vmatprep.subr.mxu0 %v2026_v1  ;;  %1827 = vmatpush3.msra.mxu1 %v452_v3  ;;  %s357_s28 = scalar_lea.vmem %s2331_s1, %s2158_s17  ;;  %s353_s14 = scalar_lea.vmem %s2330_s0, %s2158_s17  ;;  %v449_v9 = vld [vmem:[%s2335_s5] sm:$0xff]  ;;  %v548_v54 = vld [vmem:[%s2337_s7 + $0x8] sm:$0xff] }
  0x17   : > { %1818 = vmatpush3.msra.mxu0 %v366_v2  ;;  %1828 = vmatprep.subr.mxu1 %v2026_v1  ;;  %v363_v8 = vld [vmem:[%s357_s28] sm:$0xff]  ;;  %s361_s27 = scalar_lea.vmem %s2332_s2, %s2158_s17  ;;  %vm539_vm4 = vcmp.gt.s32.totalorder %v538_v28, %v536_v27  ;;  %s2031_s17 = smov 88  }
  0x18   : > { %1819 = vmatprep.subr.mxu0 %v2026_v1  ;;  %1829 = vmatpush3.msra.mxu1 %v451_v4  ;;  %v362_v10 = vld [vmem:[%s353_s14] sm:$0xff]  ;;  %s2032_s14 = smov 112  }
  0x19   : > { %1820 = vmatpush3.msra.mxu0 %v365_v5  ;;  %1830 = vmatprep.subr.mxu1 %v2026_v1  ;;  %v1756_v11 = vld [vmem:[%s2334_s4] ss:$0 sm:$0xff] }
  0x1a   : > { %1821 = vmatprep.subr.mxu0 %v2026_v1  ;;  %1831 = vmatpush3.msra.mxu1 %v450_v6  ;;  %v1758_v13 = vld [vmem:[%s2336_s6] ss:$0 sm:$0xff] }
  0x1b   : > { %1822 = vmatpush3.msra.mxu0 %v364_v7  ;;  %1832 = vmatprep.subr.mxu1 %v2026_v1  ;;  %v533_v18 = vld [vmem:[%s361_s27] sm:$0xff] }
  0x1c   : > { %1824 = vmatmul.mubr.msk.f32.vlgmr.msra.gmra.mxu0 %vm375_vm1, %v363_v8  ;;  %1833 = vmatpush3.msra.mxu1 %v449_v9  ;;  %vm534_vm2 = vcmp.eq.f32.partialorder %v533_v18, 0.0  ;;  %v547_v53 = vld [vmem:[%s2337_s7] sm:$0xff] }
  0x1d   : > { %1834 = vmatprep.mubr.msk.f32.mxu1 %vm2027_vm0, %v2026_v1  ;;  %1837 = vmatprep.subr.mxu0 %v2026_v1  ;;  %v540_v21 = vsel %vm534_vm2, 1, %v2028_v15 }
  0x1e   : > { %1835 = vmatmul.mubr.msk.f32.vlgmr.msra.gmra.mxu1 %vm375_vm1, %v362_v10  ;;  %1839 = vmatprep.mubr.msk.f32.mxu0 %vm2027_vm0, %v2026_v1 }
  0x1f   : > { %1842 = vmatprep.subr.mxu1 %v2026_v1  ;;  %1844 = vmatprep.mubr.msk.f32.mxu1 %vm2027_vm0, %v2026_v1 }
  0x20   : > { %1947 = vset.pattern.permute.xlu0 %v2028_v15 }
  0xdc   : > { %v445_v12 = vpop.f32.mrf.mxu0 }
  0xdd   : > { %v2202_v14 = vadd.f32 %v1756_v11, %v445_v12 }
  0xde   : > { %v1825_v16 = vpop.f32.mrf.mxu0  ;;  %v529_v17 = vpop.f32.mrf.mxu1 }
  0xdf   : > { %551 = vxpose.xlu1.b32.start.end [1/1] (short) (narrow) %v2202_v14, 8  ;;  %748 = vrot.lane.b32.xlu0 %v2202_v14, %s2029_s29  ;;  %v2206_v19 = vadd.f32 %v1758_v13, %v529_v17 }
  0xe0   : > { %v1836_v20 = vpop.f32.mrf.mxu1 }
  0xe1   : > { %1838 = vmatpush3.msra.mxu0 %v2206_v19 }
  0xe2   : > { %1847 = vmatprep.subr.mxu0 %v2026_v1 }
  0xe3   : > { %783 = vrot.lane.b32.xlu0 %v2206_v19, %s2029_s29  ;;  %s2036_s29 = smov 72  }
  0xe7   : > { %542 = vperm.xlu0 %1947, %v540_v21  }
 0x151   : > { %v749_v22 = vpop.permute.xlu0 %748 }
 0x152   : > { %751 = vxpose.xlu1.b32.start.end [1/1] (short) (narrow) %v749_v22, 8 }
 0x155   : > { %v784_v23 = vpop.permute.xlu0 %783 }
 0x15b   : > { %v567_v24 = vpop.trf.xlu1 }
 0x15c   : > { %1840 = vmatmul.mubr.msk.f32.vlgmr.msra.gmra.mxu0 %vm583_vm3, %v567_v24 }
 0x15d   : > { %1848 = vmatpush3.msra.mxu0 %v784_v23  ;;  %1849 = vmatprep.mubr.msk.f32.mxu0 %vm2027_vm0, %v2026_v1  ;;  %v549_v23 = vld [vmem:[%s2337_s7 + $0x10] sm:$0xff] }
 0x15e   : > { %1857 = vmatprep.subr.mxu0 %v2026_v1 }
 0x162   : > { %v543_v29 = vpop.permute.xlu0 %542 }
 0x163   : > { %vm544_vm5 = vcmp.eq.s32.totalorder %v543_v29, 1 }
 0x164   : > { %vm545_vm6 = vmor %vm544_vm5, %vm539_vm4 }
 0x165   : > { %v2218_v31 = vsel %vm545_vm6, 0.0, %v2030_v30 }
 0x1ce   : > { %v767_v25 = vpop.trf.xlu1 }
 0x1cf   : > { %1850 = vmatmul.mubr.msk.f32.vlgmr.msra.gmra.mxu0 %vm583_vm3, %v767_v25 }
 0x1d0   : > { %1859 = vmatprep.mubr.msk.f32.mxu0 %vm2027_vm0, %v2026_v1  ;;  %1858 = vmatpush3.msra.mxu0 %v548_v54 }
 0x1d1   : > { %1867 = vmatprep.subr.mxu0 %v2026_v1 }
 0x21c   : > { %v653_v32 = vpop.f32.mrf.mxu0 }
 0x21d   : > { %v657_v33 = vmul.f32 %v653_v32, %v2218_v31 }
 0x21e   : > { %v1841_v34 = vpop.f32.mrf.mxu0 }
 0x21f   : > { %v658_v35 = vsel %vm583_vm3, %v657_v33, -inf }
 0x220   : > { %659 = vmax.xlane.f32.xlu1 %v658_v35 }
 0x231   : > { %870 = vrot.lane.b32.xlu1 %v2206_v19, %s2031_s17 }
 0x235   : > { %1094 = vrot.lane.b32.xlu1 %v2202_v14, %s2032_s14 }
 0x28f   : > { %v855_v36 = vpop.f32.mrf.mxu0 }
 0x290   : > { %v859_v37 = vmul.f32 %v855_v36, %v2218_v31 }
 0x291   : > { %v1851_v38 = vpop.f32.mrf.mxu0 }
 0x292   : > { %v860_v39 = vsel %vm583_vm3, %v859_v37, -inf }
 0x293   : > { %861 = vmax.xlane.f32.xlu0 %v860_v39 }
 0x2a9   : > { %669 = vrot.lane.b32.xlu0 %v2206_v19, %s2033_s16  ;;  %v660_v40 = vpop.xlane.xlu1 %659  ;;  %s347_s16 = sand.u32 1, %s2016_s10  }
 0x2aa   : > { %v661_v43 = vsub.f32 %v657_v33, %v660_v40  ;;  %s1652_s17 = scalar_lea.sflag [#allocation3], %s347_s16 }
 0x2ac   : > { %v662_v44 = vmul.f32 1.442695, %v661_v43 }
 0x2ad   : > { %1129 = vrot.lane.b32.xlu0 %v2206_v19, %s2032_s14  ;;  %v871_v41 = vpop.permute.xlu1 %870 }
 0x2ae   : > { %1948 = vpow2.f32 %v662_v44 }
 0x2b1   : > { %v1095_v42 = vpop.permute.xlu1 %1094 }
 0x2bb   : > { %v1949_v45 = vpop.eup %1948 }
 0x2bc   : > { %v664_v46 = vsel %vm583_vm3, %v1949_v45, 0.0 }
 0x2cb   : > { %1097 = vxpose.xlu0.b32.start.end [1/1] (short) (narrow) %v1095_v42, 8 }
 0x2f8   : > { %665 = vadd.xlane.f32.xlu0 %v664_v46 }
 0x31c   : > { %v862_v47 = vpop.xlane.xlu0 %861 }
 0x31d   : > { %v863_v48 = vsub.f32 %v859_v37, %v862_v47  ;;  %v1776_v47 = vld [vmem:[%s2338_s8] ss:$0 sm:$0xff] }
 0x31f   : > { %v864_v49 = vmul.f32 1.442695, %v863_v48 }
 0x320   : > { %v670_v50 = vpop.permute.xlu0 %669 }
 0x321   : > { %1950 = vpow2.f32 %v864_v49  ;;  %1843 = vmatpush3.xpose.msk.msra.mxu1 %vm583_vm3, %v670_v50 }
 0x322   : > { %1852 = vmatprep.subr.mxu1 %v2026_v1 }
 0x324   : > { %1845 = vmatmul.mubr.msk.f32.vlgmr.msra.gmra.mxu1 %vm583_vm3, %v1949_v45  ;;  %v1130_v55 = vpop.permute.xlu0 %1129 }
 0x325   : > { %1853 = vmatpush3.xpose.msk.msra.mxu1 %vm583_vm3, %v871_v41  ;;  %1854 = vmatprep.mubr.msk.f32.mxu1 %vm2027_vm0, %v2026_v1 }
 0x326   : > { %1862 = vmatprep.subr.mxu1 %v2026_v1 }
 0x32e   : > { %v1951_v51 = vpop.eup %1950 }
 0x32f   : > { %1855 = vmatmul.mubr.msk.f32.vlgmr.msra.gmra.mxu1 %vm583_vm3, %v1951_v51  ;;  %v866_v52 = vsel %vm583_vm3, %v1951_v51, 0.0 }
 0x330   : > { %867 = vadd.xlane.f32.xlu1 %v866_v52  ;;  %1864 = vmatprep.mubr.msk.f32.mxu1 %vm2027_vm0, %v2026_v1 }
 0x331   : > { %1863 = vmatpush3.msra.mxu1 %v547_v53 }
 0x332   : > { %1872 = vmatprep.subr.mxu1 %v2026_v1 }
 0x341   : > { %1368 = vrot.lane.b32.xlu1 %v2202_v14, %s2034_s21 }
 0x345   : > { %1216 = vrot.lane.b32.xlu1 %v2206_v19, %s2035_s22  ;;  %s2037_s22 = smov [#allocation2]  }
 0x346   : > { %s1968_s13 = sshll.u32 %s2037_s22, 4  ;;  %s1969_s13 = int_to_ptr.vmem [resolvable:$false] %s1968_s13 }
 0x347   : > { %v1113_v56 = vpop.trf.xlu0 }
 0x381   : > { %v666_v57 = vpop.xlane.xlu0 %665 }
 0x382   : > { %1952 = vrcp.f32 %v666_v57 }
 0x38f   : > { %v1953_v60 = vpop.eup %1952 }
 0x3b9   : > { %v868_v58 = vpop.xlane.xlu1 %867 }
 0x3ba   : > { %1954 = vrcp.f32 %v868_v58 }
 0x3bd   : > { %v1369_v59 = vpop.permute.xlu1 %1368 }
 0x3c1   : > { %v1217_v0 = vpop.permute.xlu1 %1216 }
 0x3c7   : > { %v1955_v2 = vpop.eup %1954 }
 0x3e4   : > { %v742_v61 = vpop.f32.mrf.mxu1 }
 0x3e5   : > { %v746_v62 = vmul.f32 %v1953_v60, %v742_v61 }
 0x3e6   : > { %v1846_v63 = vpop.f32.mrf.mxu1 }
 0x3e7   : > { %1865 = vmatmul.mubr.msk.f32.vlgmr.msra.gmra.mxu1 %vm583_vm3, %v746_v62 }
 0x3e8   : > { %1873 = vmatpush3.xpose.msk.msra.mxu1 %vm583_vm3, %v1217_v0  ;;  %1874 = vmatprep.mubr.msk.f32.mxu1 %vm2027_vm0, %v2026_v1 }
 0x3e9   : > { %1882 = vmatprep.subr.mxu1 %v2026_v1 }
 0x3ef   : > { %v943_v3 = vpop.f32.mrf.mxu1 }
 0x3f0   : > { %v947_v4 = vmul.f32 %v1955_v2, %v943_v3 }
 0x3f1   : > { %v1856_v5 = vpop.f32.mrf.mxu1 }
 0x3f2   : > { %1860 = vmatmul.mubr.msk.f32.vlgmr.msra.gmra.mxu0 %vm583_vm3, %v947_v4 }
 0x3f3   : > { %1868 = vmatpush3.msra.mxu0 %v1130_v55  ;;  %1869 = vmatprep.mubr.msk.f32.mxu0 %vm2027_vm0, %v2026_v1 }
 0x3f4   : > { %1877 = vmatprep.subr.mxu0 %v2026_v1 }
 0x3f6   : > { %1870 = vmatmul.mubr.msk.f32.vlgmr.msra.gmra.mxu0 %vm583_vm3, %v1113_v56 }
 0x3f7   : > { %1879 = vmatprep.mubr.msk.f32.mxu0 %vm2027_vm0, %v2026_v1  ;;  %1878 = vmatpush3.msra.mxu0 %v549_v23 }
 0x3f8   : > { %1887 = vmatprep.subr.mxu0 %v2026_v1 }
 0x4a7   : > { %v1090_v6 = vpop.f32.mrf.mxu1 }
 0x4a9   : > { %v1866_v7 = vpop.f32.mrf.mxu1 }
 0x4b2   : > { %v1017_v8 = vpop.f32.mrf.mxu0 }
 0x4b3   : > { %v1091_v9 = vadd.f32 %v1090_v6, %v1017_v8 }
 0x4b4   : > { %v1861_v10 = vpop.f32.mrf.mxu0 }
 0x4b6   : > { %v1201_v11 = vpop.f32.mrf.mxu0 }
 0x4b7   : > { %v1205_v12 = vmul.f32 %v1201_v11, %v2218_v31 }
 0x4b8   : > { %v1871_v13 = vpop.f32.mrf.mxu0 }
 0x4b9   : > { %v1206_v14 = vsel %vm583_vm3, %v1205_v12, -inf }
 0x4ba   : > { %1207 = vmax.xlane.f32.xlu1 %v1206_v14 }
 0x4cb   : > { %1403 = vrot.lane.b32.xlu1 %v2206_v19, %s2034_s21  ;;  %s1752_s21 = sshll.u32 %s347_s16, 3 }
 0x4cc   : > { %s349_s25 = scalar_lea.vmem [#allocation2], %s1752_s21  ;;  %s1970_s21 = scalar_lea.vmem %s1969_s13, 256 }
 0x4cd   : > { %s1665_s26 = sshll.u32 %s349_s25, 4  ;;  %s1666_s26 = int_to_ptr.vmem [resolvable:$true] %s1665_s26 }
 0x4ce   : > { %s1964_s14 = scalar_lea.vmem %s1666_s26, 128  ;;  %p1971_p0 = scmp.lt.s32.totalorder %s1666_s26, %s1969_s13 }
 0x4cf   : > { %p1965_p11 = scmp.ne.s32.totalorder %s1666_s26, %s1964_s14  ;;  %p1972_p1 = scmp.lt.s32.totalorder %s1970_s21, %s1964_s14 }
 0x4d1   : > { %p1966_p12 = pnand %p1965_p11, %p2126_p5  ;;  %p1973_p2 = por %p1972_p1, %p1971_p0 }
 0x4d3   : > { %p1967_p13 = pneg %p1966_p12 }
 0x4d5   : > { %p1974_p3 = pnand %p1973_p2, %p1967_p13 }
 0x4f4   : > { %1371 = vxpose.xlu1.b32.start.end [1/1] (short) (narrow) %v1369_v59, 8 }
 0x543   : > { %v1208_v15 = vpop.xlane.xlu1 %1207 }
 0x544   : > { %v1209_v16 = vsub.f32 %v1205_v12, %v1208_v15 }
 0x546   : > { %v1210_v17 = vmul.f32 1.442695, %v1209_v16 }
 0x547   : > { %v1404_v20 = vpop.permute.xlu1 %1403 }
 0x548   : > { %1956 = vpow2.f32 %v1210_v17 }
 0x555   : > { %v1957_v18 = vpop.eup %1956 }
 0x556   : > { %1875 = vmatmul.mubr.msk.f32.vlgmr.msra.gmra.mxu1 %vm583_vm3, %v1957_v18  ;;  %v1212_v21 = vsel %vm583_vm3, %v1957_v18, 0.0 }
 0x557   : > { %1883 = vmatpush3.msra.mxu1 %v1404_v20  ;;  %1213 = vadd.xlane.f32.xlu0 %v1212_v21 }
 0x558   : > { %1884 = vmatprep.mubr.msk.f32.mxu1 %vm2027_vm0, %v2026_v1  ;;  %1892 = vmatprep.subr.mxu1 %v2026_v1 }
 0x570   : > { %v1387_v22 = vpop.trf.xlu1 }
 0x571   : > { %1885 = vmatmul.mubr.msk.f32.vlgmr.msra.gmra.mxu1 %vm583_vm3, %v1387_v22 }
 0x572   : > { %1894 = vmatprep.mubr.msk.f32.mxu1 %vm2027_vm0, %v2026_v1 }
 0x5e0   : > { %v1214_v24 = vpop.xlane.xlu0 %1213 }
 0x5e1   : > { %1958 = vrcp.f32 %v1214_v24 }
 0x5ee   : > { %v1959_v25 = vpop.eup %1958 }
 0x616   : > { %v1289_v26 = vpop.f32.mrf.mxu1 }
 0x617   : > { %v1293_v27 = vmul.f32 %v1959_v25, %v1289_v26 }
 0x618   : > { %v1876_v28 = vpop.f32.mrf.mxu1 }
 0x619   : > { %1880 = vmatmul.mubr.msk.f32.vlgmr.msra.gmra.mxu0 %vm583_vm3, %v1293_v27 }
 0x61a   : > { %1889 = vmatprep.mubr.msk.f32.mxu0 %vm2027_vm0, %v2026_v1 }
 0x631   : > { %v1475_v29 = vpop.f32.mrf.mxu1 }
 0x632   : > { %v1479_v30 = vmul.f32 %v1475_v29, %v2218_v31 }
 0x633   : > { %v1886_v32 = vpop.f32.mrf.mxu1 }
 0x634   : > { %v1480_v33 = vsel %vm583_vm3, %v1479_v30, -inf }
 0x635   : > { %1481 = vmax.xlane.f32.xlu0 %v1480_v33 }
 0x64b   : > { %1490 = vrot.lane.b32.xlu0 %v2206_v19, %s2036_s29  ;;  %v550_v19 = vld [vmem:[%s2337_s7 + $0x18] sm:$0xff]  ;;  %s1663_s29 = scalar_lea.hbm %s2339_s9, %s1778_s24 }
 0x64c   : > { %1893 = vmatpush3.msra.mxu1 %v550_v19 }
 0x6be   : > { %v1482_v34 = vpop.xlane.xlu0 %1481 }
 0x6bf   : > { %v1483_v35 = vsub.f32 %v1479_v30, %v1482_v34 }
 0x6c1   : > { %v1484_v36 = vmul.f32 1.442695, %v1483_v35 }
 0x6c2   : > { %v1491_v37 = vpop.permute.xlu0 %1490 }
 0x6c3   : > { %1960 = vpow2.f32 %v1484_v36  ;;  %1888 = vmatpush3.xpose.msk.msra.mxu0 %vm583_vm3, %v1491_v37 }
 0x6d0   : > { %v1961_v38 = vpop.eup %1960 }
 0x6d1   : > { %1890 = vmatmul.mubr.msk.f32.vlgmr.msra.gmra.mxu0 %vm583_vm3, %v1961_v38  ;;  %v1486_v1 = vsel %vm583_vm3, %v1961_v38, 0.0 }
 0x6d2   : > { %1487 = vadd.xlane.f32.xlu1 %v1486_v1 }
 0x6d9   : > { %v1363_v31 = vpop.f32.mrf.mxu0 }
 0x6da   : > { %v1367_v39 = vadd.f32 %v1363_v31, %v1091_v9 }
 0x6db   : > { %v1881_v40 = vpop.f32.mrf.mxu0 }
 0x75b   : > { %v1488_v41 = vpop.xlane.xlu1 %1487 }
 0x75c   : > { %1962 = vrcp.f32 %v1488_v41 }
 0x769   : > { %v1963_v42 = vpop.eup %1962 }
 0x791   : > { %v1563_v43 = vpop.f32.mrf.mxu0 }
 0x792   : > { %v1567_v44 = vmul.f32 %v1963_v42, %v1563_v43 }
 0x793   : > { %v1891_v45 = vpop.f32.mrf.mxu0 }
 0x794   : > { %1895 = vmatmul.mubr.msk.f32.vlgmr.msra.gmra.mxu1 %vm583_vm3, %v1567_v44 }
 0x854   : > { %v1637_v46 = vpop.f32.mrf.mxu1 }
 0x855   : > { %v1641_v48 = vadd.f32 %v1637_v46, %v1367_v39 }
 0x856   : > { %v1896_v49 = vpop.f32.mrf.mxu1 }
 0x857   : > { %v1649_v50 = vadd.f32 %v1776_v47, %v1641_v48 }
 0x859   : > { %1650 = vst.msk [vmem:[%s349_s25] sm:$0xff] %vm375_vm1, %v1649_v50 }
 0x85a   : > { %1977 = shalt.err (!%p1974_p3)
}
 0x85b   : > { %s1978_s23 = scalar_lea.hbm %s1663_s29, 128  ;;  %s1982_s25 = scalar_lea.hbm %s2339_s9, 256 }
 0x85c   : > { %p1979_p4 = scmp.ne.s32.totalorder %s1663_s29, %s1978_s23  ;;  %p1983_p9 = scmp.lt.s32.totalorder %s1663_s29, %s2339_s9 }
 0x85d   : > { %p1984_p10 = scmp.lt.s32.totalorder %s1982_s25, %s1978_s23 }
 0x85e   : > { %p1980_p7 = pnand %p1979_p4, %p2126_p5 }
 0x85f   : > { %p1985_p11 = por %p1984_p10, %p1983_p9 }
 0x860   : > { %p1981_p8 = pneg %p1980_p7 }
 0x862   : > { %p1986_p12 = pnand %p1985_p11, %p1981_p8 }
 0x864   : > { %1989 = shalt.err (!%p1986_p12)
}
 0x865   : > { %1897 = dma.vmem_to_hbm [thread:$0]  (%p2126_p5), %s1666_s26, 128, %s1663_s29, %s1652_s17  }
 0x866 PF: > { %p1903_p13 = scmp.ge.s32.totalorder %s2024_s12, 2  ;;  %s1677_s14 = sand.u32 1, %s2012_s30  }
 0x867   : > { %s1678_s22 = scalar_lea.sflag [#allocation3], %s1677_s14 }
 0x868   : > { %p1900_p0 = pnand %p1903_p13, %p2130_p6 }
 0x86a   : > { %p1901_p1 = pneg %p1900_p0 }
 0x86c   : > { %2007 = dma.done.wait (%p1901_p1), %s1678_s22, 128  }
 0x86d   : > { %2009 = vsyncadd (%p1901_p1), %s1678_s22, 4294967168  ;;  %p19_p2 = scmp.ge.s32.totalorder %s2113_s15, 4   ;;  %s2342_s30 = smov %s2016_s10 }
 0x86e   : > { %s2343_s10 = smov %s2020_s11  ;;  %s2344_s11 = smov %s2124_s18 }
 0x86f   : > { %s2345_s12 = smov %s2113_s15  ;;  %21 = sbr.rel (!%p19_p2) target bundleno = 3 (0x3), region = 97 }
 0x874   :  { %1683 = vsyncpa [#allocation3], 1 }
 0x875   :  { %1685 = vsyncpa [#allocation3 + $0x1], 1 }

</bundles_post_ra>
